<compile_context>
chip_gen: v7x
topology: tpu7x:2x2x1
jax: 0.10.0
libtpu: 0.0.40
codegen_flags: <defaults>
</compile_context>

<pallas_src>
import functools

import jax
import jax.numpy as jnp
from jax.experimental import pallas as pl
from jax.experimental.pallas import tpu as pltpu


def _timestep_embedding_kernel(x_ref, w1_ref, b1_ref, w2_ref, b2_ref, o_ref, *, tn):
    j = pl.program_id(1)

    # linear_1 + SiLU, recomputed for every output-column tile.  FLOPs are
    # trivial and w1 is VMEM-resident (constant index map), so this costs no
    # extra HBM traffic -- and removing the cross-iteration cache lets both
    # grid axes be "parallel" (v7x megacore sharding of the w2 column tiles).
    h = jnp.dot(x_ref[...], w1_ref[...], preferred_element_type=jnp.float32)
    h = h + b1_ref[...]
    h = h * jax.nn.sigmoid(h)            # SiLU in f32 (EUP exp + VPU mul)

    # linear_2 column block: [tm, D] @ [D, tn]; bf16 inputs, f32 accumulate.
    y = jnp.dot(h.astype(w2_ref.dtype), w2_ref[...],
                preferred_element_type=jnp.float32)

    # b2 is resident full-width; slice it here instead of a per-step DMA.
    start = pl.multiple_of(j * tn, tn)
    y = y + b2_ref[:, pl.ds(start, tn)]
    o_ref[...] = y.astype(o_ref.dtype)


def timestep_embedding(sample, w1, b1, w2, b2, *, out_dtype=None):
    """sample: [B, C]; w1: [C, D]; b1: [D]; w2: [D, D]; b2: [D].

    Weights are stored [in_features, out_features] (transpose of torch Linear)
    so both matmuls are plain row-major MXU passes.
    """
    B, C = sample.shape
    D = w1.shape[1]
    if out_dtype is None:
        out_dtype = sample.dtype
    out_bytes = jnp.dtype(out_dtype).itemsize

    # ---- Tile selection: fewer, fatter steps --------------------------------
    # Batch in one tile whenever possible (avoids re-streaming w2 per batch
    # tile); otherwise a multiple of 8.
    tm = B if B <= 512 else 512

    VMEM_BUDGET = 44 << 20          # conservative vs. v7x's 64 MiB physical VMEM

    def footprint(tn):
        nj = pl.cdiv(D, tn)
        by = 2 * tm * C * 4                        # x  (f32, double buffered)
        by += C * D * 4                            # w1 (f32, single buffered)
        by += D * 4                                # b1 (f32, single buffered)
        by += (1 if nj == 1 else 2) * D * tn * 2   # w2 (bf16)
        by += D * 4                                # b2 (f32, single buffered)
        by += 2 * tm * tn * out_bytes              # out (double buffered)
        by += tm * D * 4                           # h intermediate (f32)
        return by

    candidates = [D] + [t for t in (2048, 1024, 512, 256, 128)
                        if t < D and D % t == 0]
    tn = candidates[-1]
    for t in candidates:
        if footprint(t) <= VMEM_BUDGET:
            tn = t
            break
    n_i = pl.cdiv(B, tm)
    n_j = pl.cdiv(D, tn)

    # Explicit scoped-VMEM limit (defaults: 16 MiB v5e, 32 MiB v6e/v7x); cap
    # below v7x's 64 MiB physical.
    vmem_limit = int(min(max(footprint(tn) + (4 << 20), 32 << 20), 60 << 20))

    # Precision: w2 (dominant HBM bytes) in bf16; x / w1 / biases in f32.
    x_f32 = sample.astype(jnp.float32)
    w1_f32 = w1.astype(jnp.float32)
    w2_bf = w2.astype(jnp.bfloat16)
    b1_2d = b1.reshape(1, D).astype(jnp.float32)
    b2_2d = b2.reshape(1, D).astype(jnp.float32)

    # Grid-invariant inputs: single-buffered (DMA'd once, never re-fetched).
    w1_spec = pl.BlockSpec((C, D), lambda i, j: (0, 0), pipeline_mode=pl.Buffered(1))
    b1_spec = pl.BlockSpec((1, D), lambda i, j: (0, 0), pipeline_mode=pl.Buffered(1))
    b2_spec = pl.BlockSpec((1, D), lambda i, j: (0, 0), pipeline_mode=pl.Buffered(1))
    if n_j == 1:
        w2_spec = pl.BlockSpec((D, tn), lambda i, j: (0, j),
                               pipeline_mode=pl.Buffered(1))
    else:
        w2_spec = pl.BlockSpec((D, tn), lambda i, j: (0, j))

    cost = pl.CostEstimate(
        flops=2 * B * (C * D * n_j + D * D),
        transcendentals=B * D * n_j,
        bytes_accessed=(B * C * 4 + C * D * 4 + D * D * 2 + 2 * D * 4
                        + B * D * out_bytes),
    )

    kernel = functools.partial(_timestep_embedding_kernel, tn=tn)

    return pl.pallas_call(
        kernel,
        out_shape=jax.ShapeDtypeStruct((B, D), out_dtype),
        grid=(n_i, n_j),
        in_specs=[
            pl.BlockSpec((tm, C), lambda i, j: (i, 0)),   # x: one block per batch tile
            w1_spec,                                      # w1: full, resident
            b1_spec,                                      # b1: full, resident
            w2_spec,                                      # w2: fat column block
            b2_spec,                                      # b2: full width, resident
        ],
        out_specs=pl.BlockSpec((tm, tn), lambda i, j: (i, j)),
        compiler_params=pltpu.CompilerParams(
            dimension_semantics=("parallel", "parallel"),
            vmem_limit_bytes=vmem_limit,
        ),
        cost_estimate=cost,
    )(x_f32, w1_f32, b1_2d, w2_bf, b2_2d)


def reference_f32(sample, w1, b1, w2, b2):
    h = sample @ w1 + b1
    h = h * jax.nn.sigmoid(h)
    return h @ w2 + b2


def reference_mixed(sample, w1, b1, w2, b2):
    # Mirrors the kernel's precision contract: f32 linear_1 + SiLU,
    # bf16 inputs / f32 accumulate for linear_2.
    h = jnp.dot(sample.astype(jnp.float32), w1.astype(jnp.float32),
                preferred_element_type=jnp.float32) + b1
    h = h * jax.nn.sigmoid(h)
    return jnp.dot(h.astype(jnp.bfloat16), w2.astype(jnp.bfloat16),
                   preferred_element_type=jnp.float32) + b2


if __name__ == "__main__":
    # Small shapes consistent with the module: channel=32, time_embed_dim=128, batch=8.
    B, C, D = 8, 32, 128

    key = jax.random.PRNGKey(0)
    k_x, k_w1, k_b1, k_w2, k_b2 = jax.random.split(key, 5)

    bound1 = 1.0 / (C ** 0.5)
    bound2 = 1.0 / (D ** 0.5)
    w1 = jax.random.uniform(k_w1, (C, D), jnp.float32, -bound1, bound1)
    b1 = jax.random.uniform(k_b1, (D,), jnp.float32, -bound1, bound1)
    w2 = jax.random.uniform(k_w2, (D, D), jnp.float32, -bound2, bound2)
    b2 = jax.random.uniform(k_b2, (D,), jnp.float32, -bound2, bound2)

    sample = jax.random.normal(k_x, (B, C), jnp.float32)

    out = jax.block_until_ready(timestep_embedding(sample, w1, b1, w2, b2))

    ref_mx = reference_mixed(sample, w1, b1, w2, b2)
    ref_fp = reference_f32(sample, w1, b1, w2, b2)

    assert out.shape == (B, D)
    assert out.dtype == sample.dtype
    # Same mixed-precision math -> tight; vs. pure f32 -> bf16-level tolerance.
    assert jnp.allclose(out, ref_mx, atol=2e-3, rtol=2e-3), "mismatch vs mixed reference"
    assert jnp.allclose(out, ref_fp, atol=2e-2, rtol=2e-2), "mismatch vs f32 reference"

    print("KERNEL_OK")
</pallas_src>

<mosaic_0001>
module attributes {stable_mosaic.version = 11 : i64} {
  func.func @_timestep_embedding_kernel(%arg0: i32, %arg1: i32, %arg2: memref<8x32xf32, #tpu.memory_space<vmem>>, %arg3: memref<32x128xf32, #tpu.memory_space<vmem>>, %arg4: memref<1x128xf32, #tpu.memory_space<vmem>>, %arg5: memref<128x128xbf16, #tpu.memory_space<vmem>>, %arg6: memref<1x128xf32, #tpu.memory_space<vmem>>, %arg7: memref<8x128xf32, #tpu.memory_space<vmem>>) attributes {dimension_semantics = [#tpu.dimension_semantics<parallel>, #tpu.dimension_semantics<parallel>], iteration_bounds = array<i64: 1, 1>, scalar_prefetch = 0 : i64, scratch_operands = 0 : i64, tpu.core_type = #tpu.core_type<tc>, window_params = [{transform_indices = @transform_0, window_bounds = array<i64: 8, 32>}, {pipeline_mode = #tpu.pipeline_mode<synchronous>, transform_indices = @transform_1, window_bounds = array<i64: 32, 128>}, {pipeline_mode = #tpu.pipeline_mode<synchronous>, transform_indices = @transform_2, window_bounds = array<i64: 1, 128>}, {pipeline_mode = #tpu.pipeline_mode<synchronous>, transform_indices = @transform_3, window_bounds = array<i64: 128, 128>}, {pipeline_mode = #tpu.pipeline_mode<synchronous>, transform_indices = @transform_4, window_bounds = array<i64: 1, 128>}, {transform_indices = @transform_5, window_bounds = array<i64: 8, 128>}]} {
    %c0 = arith.constant 0 : index
    %c0_0 = arith.constant 0 : index
    %0 = vector.load %arg2[%c0, %c0_0] : memref<8x32xf32, #tpu.memory_space<vmem>>, vector<8x32xf32>
    %c0_1 = arith.constant 0 : index
    %c0_2 = arith.constant 0 : index
    %1 = vector.load %arg3[%c0_1, %c0_2] : memref<32x128xf32, #tpu.memory_space<vmem>>, vector<32x128xf32>
    %cst = arith.constant dense<0.000000e+00> : vector<8x128xf32>
    %2 = tpu.matmul %0, %1, %cst {dimension_numbers = #tpu.dot_dimension_numbers<[1], [0], [0], [1], [0, 0, 1, 1], [], []>} : vector<8x32xf32>, vector<32x128xf32>, vector<8x128xf32> -> vector<8x128xf32>
    %c0_3 = arith.constant 0 : index
    %c0_4 = arith.constant 0 : index
    %3 = vector.load %arg4[%c0_3, %c0_4] : memref<1x128xf32, #tpu.memory_space<vmem>>, vector<1x128xf32>
    %4 = vector.broadcast %3 : vector<1x128xf32> to vector<8x128xf32>
    %5 = arith.addf %2, %4 : vector<8x128xf32>
    %6 = arith.negf %5 : vector<8x128xf32>
    %7 = math.exp %6 : vector<8x128xf32>
    %cst_5 = arith.constant 1.000000e+00 : f32
    %8 = vector.broadcast %cst_5 : f32 to vector<8x128xf32>
    %9 = arith.addf %8, %7 : vector<8x128xf32>
    %10 = arith.divf %8, %9 : vector<8x128xf32>
    %11 = arith.mulf %5, %10 : vector<8x128xf32>
    %12 = arith.truncf %11 : vector<8x128xf32> to vector<8x128xbf16>
    %c0_6 = arith.constant 0 : index
    %c0_7 = arith.constant 0 : index
    %13 = vector.load %arg5[%c0_6, %c0_7] : memref<128x128xbf16, #tpu.memory_space<vmem>>, vector<128x128xbf16>
    %cst_8 = arith.constant dense<0.000000e+00> : vector<8x128xf32>
    %14 = tpu.matmul %12, %13, %cst_8 {dimension_numbers = #tpu.dot_dimension_numbers<[1], [0], [0], [1], [0, 0, 1, 1], [], []>} : vector<8x128xbf16>, vector<128x128xbf16>, vector<8x128xf32> -> vector<8x128xf32>
    %c128_i32 = arith.constant 128 : i32
    %15 = arith.muli %arg1, %c128_i32 : i32
    %16 = tpu.assume_multiple %15, 128 : i32
    %c0_9 = arith.constant 0 : index
    %17 = arith.index_cast %16 : i32 to index
    %18 = vector.load %arg6[%c0_9, %17] : memref<1x128xf32, #tpu.memory_space<vmem>>, vector<1x128xf32>
    %19 = vector.broadcast %18 : vector<1x128xf32> to vector<8x128xf32>
    %20 = arith.addf %14, %19 : vector<8x128xf32>
    %c0_10 = arith.constant 0 : index
    %c0_11 = arith.constant 0 : index
    %21 = vector.load %arg7[%c0_10, %c0_11] : memref<8x128xf32, #tpu.memory_space<vmem>>, vector<8x128xf32>
    tpu.vector_store %arg7[%c0_10, %c0_11], %20 {strides = array<i32>} : memref<8x128xf32, #tpu.memory_space<vmem>>, vector<8x128xf32>,
    return
  }
  func.func @transform_0(%arg0: i32, %arg1: i32) -> (i32, i32) {
    %c0_i32 = arith.constant 0 : i32
    %c0_i32_0 = arith.constant 0 : i32
    return %arg0, %c0_i32 : i32, i32
  }
  func.func @transform_1(%arg0: i32, %arg1: i32) -> (i32, i32) {
    %c0_i32 = arith.constant 0 : i32
    %c0_i32_0 = arith.constant 0 : i32
    %c0_i32_1 = arith.constant 0 : i32
    return %c0_i32, %c0_i32_0 : i32, i32
  }
  func.func @transform_2(%arg0: i32, %arg1: i32) -> (i32, i32) {
    %c0_i32 = arith.constant 0 : i32
    %c0_i32_0 = arith.constant 0 : i32
    %c0_i32_1 = arith.constant 0 : i32
    return %c0_i32, %c0_i32_0 : i32, i32
  }
  func.func @transform_3(%arg0: i32, %arg1: i32) -> (i32, i32) {
    %c0_i32 = arith.constant 0 : i32
    %c0_i32_0 = arith.constant 0 : i32
    return %c0_i32, %arg1 : i32, i32
  }
  func.func @transform_4(%arg0: i32, %arg1: i32) -> (i32, i32) {
    %c0_i32 = arith.constant 0 : i32
    %c0_i32_0 = arith.constant 0 : i32
    %c0_i32_1 = arith.constant 0 : i32
    return %c0_i32, %c0_i32_0 : i32, i32
  }
  func.func @transform_5(%arg0: i32, %arg1: i32) -> (i32, i32) {
    %c0_i32 = arith.constant 0 : i32
    return %arg0, %arg1 : i32, i32
  }
}

</mosaic_0001>

<bundles_post_ra>
// kernel: tpu_custom_call.1
= control target key start
LH: loop header
LB: loop body
LE: loop exit
PB: predicated region body
PF: predicated region fallthrough
CT: control target
= control target key end

     0   :  { %10 = vsyncpa [#allocation3], 0  ;;  %s563_s0 = inlined_call_operand.hbm [shape: f32[8,32], index: 0, kind: input, shape index: {}]   ;;  %s564_s1 = inlined_call_operand.hbm [shape: f32[32,128], index: 1, kind: input, shape index: {}]   ;;  %s565_s2 = inlined_call_operand.vmem [shape: f32[1,128], index: 2, kind: input, shape index: {}]   ;;  %s566_s3 = inlined_call_operand.hbm [shape: bf16[128,128], index: 3, kind: input, shape index: {}]   ;;  %s567_s4 = inlined_call_operand.vmem [shape: f32[1,128], index: 4, kind: input, shape index: {}]   ;;  %s568_s5 = inlined_call_operand.hbm [shape: f32[8,128], index: 5, kind: output, shape index: {}]  }
   0x1   :  { %11 = vsyncpa [#allocation6], 0 }
   0x2   :  { %12 = vsyncpa [#allocation4], 0  ;;  %s468_s18 = smov [#allocation5]   ;;  %s374_s22 = scalar_lea.hbm %s564_s1, 512 }
   0x3   :  { %s28_s19 = sshll.u32 %s468_s18, 4  ;;  %p375_p0 = scmp.ne.s32.totalorder %s564_s1, %s374_s22  ;;  %s29_s19 = int_to_ptr.vmem [resolvable:$true] %s28_s19 }
   0x4   :  { %p378_p1 = scmp.lt.u32.totalorder %s374_s22, %s564_s1 }
   0x6   :  { %p380_p2 = pnand %p378_p1, %p375_p0 }
   0x8   :  { %383 = shalt.err (!%p380_p2)
}
   0x9   :  { %s384_s27 = scalar_lea.vmem %s29_s19, 512  ;;  %p389_p4 = scmp.lt.s32.totalorder %s29_s19, %s29_s19 }
   0xa   :  { %p385_p3 = scmp.ne.s32.totalorder %s29_s19, %s384_s27  ;;  %p390_p5 = scmp.lt.s32.totalorder %s384_s27, %s384_s27 }
   0xc   :  { %p391_p6 = por %p390_p5, %p389_p4 }
   0xe   :  { %p392_p7 = pnand %p391_p6, %p385_p3 }
  0x10   :  { %395 = shalt.err (!%p392_p7)
}
  0x11   :  { %s469_s28 = smov 128   ;;  %s470_s29 = smov 8  }
  0x12   :  { %34 = dma.hbm_to_vmem [thread:$0]  %s564_s1, 512, %s29_s19, [#allocation6], %s469_s28, %s469_s28, %s470_s29  }
  0x13   :  { %s471_s7 = smov [#allocation2]   ;;  %s472_s9 = smov [#allocation7]  }
  0x14   :  { %s19_s8 = sshll.u32 %s471_s7, 4  ;;  %s42_s10 = sshll.u32 %s472_s9, 4  ;;  %s20_s8 = int_to_ptr.vmem [resolvable:$true] %s19_s8  ;;  %s43_s10 = int_to_ptr.vmem [resolvable:$true] %s42_s10 }
  0x15   :  { %s396_s13 = scalar_lea.hbm %s563_s0, 128 }
  0x16   :  { %p397_p8 = scmp.ne.s32.totalorder %s563_s0, %s396_s13  ;;  %p400_p9 = scmp.lt.u32.totalorder %s396_s13, %s563_s0 }
  0x18   :  { %p402_p10 = pnand %p400_p9, %p397_p8 }
  0x1a   :  { %405 = shalt.err (!%p402_p10)
}
  0x1b   :  { %s406_s1 = scalar_lea.vmem %s20_s8, 128  ;;  %p411_p12 = scmp.lt.s32.totalorder %s20_s8, %s20_s8 }
  0x1c   :  { %p407_p11 = scmp.ne.s32.totalorder %s20_s8, %s406_s1  ;;  %p412_p13 = scmp.lt.s32.totalorder %s406_s1, %s406_s1 }
  0x1e   :  { %p413_p0 = por %p412_p13, %p411_p12 }
  0x20   :  { %p414_p1 = pnand %p413_p0, %p407_p11 }
  0x22   :  { %417 = shalt.err (!%p414_p1)
}
  0x23   :  { %22 = dma.hbm_to_vmem [thread:$0]  %s563_s0, 128, %s20_s8, [#allocation3]  }
  0x24   :  { %s418_s22 = scalar_lea.hbm %s566_s3, 1024 }
  0x25   :  { %p419_p2 = scmp.ne.s32.totalorder %s566_s3, %s418_s22  ;;  %p422_p3 = scmp.lt.u32.totalorder %s418_s22, %s566_s3 }
  0x27   :  { %p424_p4 = pnand %p422_p3, %p419_p2 }
  0x29   :  { %427 = shalt.err (!%p424_p4)
}
  0x2a   :  { %s428_s27 = scalar_lea.vmem %s43_s10, 1024  ;;  %p433_p6 = scmp.lt.s32.totalorder %s43_s10, %s43_s10 }
  0x2b   :  { %p429_p5 = scmp.ne.s32.totalorder %s43_s10, %s428_s27  ;;  %p434_p7 = scmp.lt.s32.totalorder %s428_s27, %s428_s27 }
  0x2d   :  { %p435_p8 = por %p434_p7, %p433_p6 }
  0x2f   :  { %p436_p9 = pnand %p435_p8, %p429_p5 }
  0x31   :  { %439 = shalt.err (!%p436_p9)
}
  0x32   :  { %s473_s0 = smov 64   ;;  %s474_s28 = smov 4  }
  0x33   :  { %48 = dma.hbm_to_vmem [thread:$0]  %s566_s3, 1024, %s43_s10, [#allocation6], %s473_s0, %s473_s0, %s474_s28  }
  0x34   :  { %462 = dma.done.wait [#allocation3], 128  }
  0x35   :  { %463 = vsyncadd [#allocation3], 4294967168 }
  0x36   :  { %464 = dma.done.wait [#allocation6], 1536  }
  0x37   :  { %465 = vsyncadd [#allocation6], 4294965760  ;;  %v475_v0 = vmov 0.0|0.0   ;;  %vm476_vm0 = vmmov 0   ;;  %v477_v1 = vmov 0.0   ;;  %v62_v2 = vld [vmem:[#allocation5] sm:$0xff] }
  0x38   :  { %345 = vmatprep.subr.bf16.mxu0 %v475_v0  ;;  %322 = vmatprep.mubr.msk.f32.mxu0 %vm476_vm0, %v477_v1  ;;  %v63_v3 = vld [vmem:[#allocation5 + $0x8] sm:$0xff]  ;;  %v64_v4 = vld [vmem:[#allocation5 + $0x10] sm:$0xff]  ;;  %v65_v6 = vld [vmem:[#allocation5 + $0x18] sm:$0xff]  ;;  %vm73_vm1 = vcmask 261120   ;;  %s478_s9 = smov [#allocation8]  }
  0x39   :  { %325 = vmatprep.subr.bf16.mxu1 %v477_v1  ;;  %341 = vmatprep.mubr.msk.bf16.mxu1 %vm476_vm0, %v477_v1  ;;  %v346_v5 = vpack.c.bf16 %v63_v3, %v62_v2  ;;  %v349_v7 = vpack.c.bf16 %v65_v6, %v64_v4  ;;  %v61_v8 = vld [vmem:[#allocation2] sm:$0xff]  ;;  %v362_v9 = vld [vmem:[#allocation7] sm:$0xff]   ;;  %v363_v10 = vld [vmem:[#allocation7 + $0x8] sm:$0xff]   ;;  %s277_s10 = sshll.u32 %s478_s9, 4  ;;  %s278_s10 = int_to_ptr.vmem [resolvable:$true] %s277_s10 }
  0x3a   :  { %326 = vmatpush3.bf16.msra.mxu1 %v362_v9  ;;  %v364_v11 = vld [vmem:[#allocation7 + $0x10] sm:$0xff]   ;;  %v365_v12 = vld [vmem:[#allocation7 + $0x18] sm:$0xff]   ;;  %v366_v13 = vld [vmem:[#allocation7 + $0x20] sm:$0xff]   ;;  %p445_p11 = scmp.lt.s32.totalorder %s278_s10, %s278_s10 }
  0x3b   :  { %347 = vmatpush3.bf16.msra.mxu0 %v346_v5  ;;  %327 = vmatprep.subr.bf16.mxu1 %v477_v1  ;;  %v367_v14 = vld [vmem:[#allocation7 + $0x28] sm:$0xff]   ;;  %v368_v15 = vld [vmem:[#allocation7 + $0x30] sm:$0xff]   ;;  %v369_v16 = vld [vmem:[#allocation7 + $0x38] sm:$0xff]  }
  0x3c   :  { %348 = vmatprep.subr.bf16.mxu0 %v475_v0  ;;  %v288_v17 = vld [vmem:[%s565_s2] ss:$0 sm:$0xff]  ;;  %s440_s2 = scalar_lea.vmem %s278_s10, 128 }
  0x3d   :  { %v291_v27 = vld [vmem:[%s567_s4] ss:$0 sm:$0xff]  ;;  %p441_p10 = scmp.ne.s32.totalorder %s278_s10, %s440_s2  ;;  %p446_p12 = scmp.lt.s32.totalorder %s440_s2, %s440_s2 }
  0x3e   :  { %328 = vmatpush3.bf16.msra.mxu1 %v363_v10 }
  0x3f   :  { %350 = vmatpush3.bf16.msra.mxu0 %v349_v7  ;;  %329 = vmatprep.subr.bf16.mxu1 %v477_v1  ;;  %p447_p13 = por %p446_p12, %p445_p11 }
  0x41   :  { %p448_p0 = pnand %p447_p13, %p441_p10 }
  0x42   :  { %323 = vmatmul.mubr.msk.f32.vlgmr.msra.gmra.mrb[0].mxu0 %vm73_vm1, %v61_v8  ;;  %330 = vmatpush3.bf16.msra.mxu1 %v364_v11 }
  0x43   :  { %331 = vmatprep.subr.bf16.mxu1 %v477_v1 }
  0x46   :  { %332 = vmatpush3.bf16.msra.mxu1 %v365_v12 }
  0x47   :  { %333 = vmatprep.subr.bf16.mxu1 %v477_v1 }
  0x4a   :  { %334 = vmatpush3.bf16.msra.mxu1 %v366_v13 }
  0x4b   :  { %335 = vmatprep.subr.bf16.mxu1 %v477_v1 }
  0x4e   :  { %336 = vmatpush3.bf16.msra.mxu1 %v367_v14 }
  0x4f   :  { %337 = vmatprep.subr.bf16.mxu1 %v477_v1 }
  0x52   :  { %338 = vmatpush3.bf16.msra.mxu1 %v368_v15 }
  0x53   :  { %339 = vmatprep.subr.bf16.mxu1 %v477_v1 }
  0x56   :  { %340 = vmatpush3.bf16.msra.mxu1 %v369_v16 }
 0x115   :  { %v143_v18 = vpop.f32.mrb[0].mxu0 }
 0x116   :  { %v144_v19 = vadd.f32 %v288_v17, %v143_v18  ;;  %v324_v20 = vpop.f32.mrb[1].mxu0 }
 0x118   :  { %v290_v21 = vmul.f32 -1.442695, %v144_v19 }
 0x11a   :  { %370 = vpow2.f32 %v290_v21 }
 0x124   :  { %v371_v22 = vpop.eup %370 }
 0x125   :  { %v150_v23 = vadd.f32 1.0, %v371_v22 }
 0x127   :  { %372 = vrcp.f32 %v150_v23 }
 0x131   :  { %v373_v24 = vpop.eup %372 }
 0x132   :  { %v153_v25 = vmul.f32 %v373_v24, %v144_v19 }
 0x134   :  { %v154_v26 = vpack.c.bf16 %v153_v25, %v153_v25 }
 0x136   :  { %342 = vmatmul.mubr.bf16.vlgmr.msra.gmra.mrb[0].mxu1 %v154_v26 }
 0x209   :  { %v264_v28 = vpop.f32.mrb[0].mxu1 }
 0x20a   :  { %v265_v29 = vadd.f32 %v291_v27, %v264_v28  ;;  %v343_v30 = vpop.f32.mrb[1].mxu1 }
 0x20b   :  { %v267_v31 = vpop.f32.mrb[2].mxu1 }
 0x20c   :  { %270 = vst [vmem:[#allocation8] sm:$0xff] %v265_v29  ;;  %v344_v32 = vpop.f32.mrb[3].mxu1 }
 0x20d   :  { %451 = shalt.err (!%p448_p0)
}
 0x20e   :  { %s452_s4 = scalar_lea.hbm %s568_s5, 128 }
 0x20f   :  { %p453_p1 = scmp.ne.s32.totalorder %s568_s5, %s452_s4  ;;  %p456_p2 = scmp.lt.u32.totalorder %s452_s4, %s568_s5 }
 0x211   :  { %p458_p3 = pnand %p456_p2, %p453_p1 }
 0x213   :  { %461 = shalt.err (!%p458_p3)
}
 0x214   :  { %280 = dma.vmem_to_hbm [thread:$0]  %s278_s10, 128, %s568_s5, [#allocation4]  }
 0x215   :  { %466 = dma.done.wait [#allocation4], 128  }
 0x216   :  { %467 = vsyncadd [#allocation4], 4294967168 }
 0x217   :  { %284 = vsyncpa [#allocation3], 1 }
 0x218   :  { %285 = vsyncpa [#allocation6], 1 }
 0x219   :  { %286 = vsyncpa [#allocation4], 1 }

</bundles_post_ra>
